<compile_context>
chip_gen: v7x
topology: tpu7x:2x2x1
jax: 0.10.0
libtpu: 0.0.40
codegen_flags: <defaults>
</compile_context>

<pallas_src>
import functools

import jax
import jax.numpy as jnp
from jax import lax
from jax.experimental import pallas as pl
from jax.experimental.pallas import tpu as pltpu

LANES = 128
SUBLANES = 8
_VREG_ELEMS = SUBLANES * LANES            # 1024
_TARGET_BLOCK_BYTES = 8 * 1024 * 1024     # ~8 MiB input blocks (double-buffered -> ~16 MiB)
_VMEM_LIMIT_BYTES = 32 * 1024 * 1024      # raise scoped-VMEM (v5e default is 16 MiB)
_CHUNK_ROWS = 64                          # rows per streamed sub-slice inside a block


def _attention_stats_kernel(att_ref, max_ref, min_ref, ssq_ref, *,
                            tm, chunk, blocks_per_part, total_blocks,
                            valid_rows_last, needs_mask, has_phantom):
    """Grid = (num_parts, blocks_per_part).

    att_ref : VMEM (tm, 128)     -- current row-tile (native dtype)
    max_ref : VMEM (8, 128) f32  -- running per-lane/sublane max     (per part)
    min_ref : VMEM (8, 128) f32  -- running per-lane/sublane min     (per part)
    ssq_ref : VMEM (8, 128) f32  -- running per-lane/sublane sum x^2 (per part)
    """
    p = pl.program_id(0)                  # "parallel" axis (2 TCs on v7x)
    j = pl.program_id(1)                  # "arbitrary" reduction axis
    blk = p * blocks_per_part + j         # global block index (phantoms possible)

    num_chunks = tm // chunk
    unroll = min(4, num_chunks)

    @pl.when(j == 0)
    def _init():
        max_ref[...] = jnp.full_like(max_ref, -jnp.inf)
        min_ref[...] = jnp.full_like(min_ref, jnp.inf)
        ssq_ref[...] = jnp.zeros_like(ssq_ref)

    def _run(body):
        # Stream the block in (chunk, 128) slices; the three (8,128) f32
        # accumulators ride in registers as fori_loop carries, so nothing
        # tm-sized is ever materialised and the hot loop is pure vld + VPU.
        init = (max_ref[...], min_ref[...], ssq_ref[...])
        mx, mn, ss = lax.fori_loop(0, num_chunks, body, init, unroll=unroll)
        max_ref[...] = mx
        min_ref[...] = mn
        ssq_ref[...] = ss

    # TODO(synk): v7x-bf16 only -- keep the max/min folds in native bf16 (or
    # offload sum-of-squares to the idle MXU via a per-block Gram matrix) if
    # profiling shows the VALU slot binding; f32-everything keeps the kernel
    # DMA-bound on v5e/v6e.
    def _full_body(i, carry):
        mx, mn, ss = carry
        off = pl.multiple_of(i * chunk, chunk)
        x = att_ref[pl.ds(off, chunk), :].astype(jnp.float32)
        xg = x.reshape(chunk // SUBLANES, SUBLANES, LANES)
        mx = jnp.maximum(mx, xg.max(axis=0))
        mn = jnp.minimum(mn, xg.min(axis=0))
        ss = ss + (xg * xg).sum(axis=0)
        return mx, mn, ss

    def _masked_body(i, carry):
        # Globally-last block only: rows >= valid_rows_last are Pallas block
        # padding (garbage).  Block-local row mask -> no int32 overflow and
        # no per-element global index arithmetic.
        mx, mn, ss = carry
        off = pl.multiple_of(i * chunk, chunk)
        x = att_ref[pl.ds(off, chunk), :].astype(jnp.float32)
        row = off + lax.broadcasted_iota(jnp.int32, (chunk, LANES), 0)
        valid = row < valid_rows_last
        xm = jnp.where(valid, x, -jnp.inf).reshape(chunk // SUBLANES, SUBLANES, LANES)
        xn = jnp.where(valid, x, jnp.inf).reshape(chunk // SUBLANES, SUBLANES, LANES)
        xs = jnp.where(valid, x * x, 0.0).reshape(chunk // SUBLANES, SUBLANES, LANES)
        mx = jnp.maximum(mx, xm.max(axis=0))
        mn = jnp.minimum(mn, xn.min(axis=0))
        ss = ss + xs.sum(axis=0)
        return mx, mn, ss

    if needs_mask:
        # Only the globally-last real block is ragged; phantom blocks
        # (blk >= total_blocks) fall through both branches and are skipped.
        @pl.when(blk < total_blocks - 1)
        def _full_tiles():
            _run(_full_body)

        @pl.when(blk == total_blocks - 1)
        def _last_tile():
            _run(_masked_body)
    elif has_phantom:
        @pl.when(blk < total_blocks)
        def _real_tiles():
            _run(_full_body)
    else:
        _run(_full_body)


def attention_loss_v2(attention: jax.Array, gamma: float = 0.2, *,
                      block_bytes: int | None = None):
    """Pallas implementation of AttentionLossV2.forward."""
    flat = attention.reshape(-1)                 # metadata-only reshape
    n = flat.shape[0]

    # Aligned prefix handled by the kernel; the (<1024-element) remainder is
    # folded in plain jnp.  This avoids a full-tensor jnp.pad copy.
    n_main = n - (n % _VREG_ELEMS)

    if n_main == 0:
        # TODO(synk): tensors with < 1024 elements skip the kernel -- a Pallas
        # launch is pure overhead at that size.
        xf = flat.astype(jnp.float32)
        sum_sq = jnp.sum(xf * xf)
        max_val = jnp.max(xf)
        min_val = jnp.min(xf)
    else:
        main = flat[:n_main] if n_main != n else flat
        slab = main.reshape(-1, LANES)           # lane-dense [rows, 128]
        rows = slab.shape[0]                     # multiple of 8
        itemsize = jnp.dtype(slab.dtype).itemsize

        target_bytes = block_bytes or _TARGET_BLOCK_BYTES
        tm_target = max(SUBLANES,
                        (target_bytes // (LANES * itemsize))
                        // SUBLANES * SUBLANES)
        tm = min(rows, tm_target)                # multiple of 8
        total_blocks = -(-rows // tm)            # ceil-div

        # Always split across 2 parts when there is >1 block (v7x: one part
        # per TensorCore; v5e/v6e: a nearly-free extra sequential step).  Odd
        # block counts produce one phantom block which the kernel skips.
        num_parts = 2 if total_blocks >= 2 else 1
        blocks_per_part = -(-total_blocks // num_parts)
        has_phantom = (num_parts * blocks_per_part) != total_blocks

        valid_rows_last = rows - (total_blocks - 1) * tm   # rows in last block
        needs_mask = valid_rows_last != tm                 # Pallas block padding

        chunk = SUBLANES
        for c in (_CHUNK_ROWS, 32, 16, 8):
            if tm % c == 0:
                chunk = c
                break

        kernel = functools.partial(
            _attention_stats_kernel,
            tm=tm, chunk=chunk,
            blocks_per_part=blocks_per_part, total_blocks=total_blocks,
            valid_rows_last=valid_rows_last,
            needs_mask=needs_mask, has_phantom=has_phantom)

        acc_shape = jax.ShapeDtypeStruct((num_parts * SUBLANES, LANES), jnp.float32)
        acc_spec = pl.BlockSpec((SUBLANES, LANES), lambda p, j: (p, 0))
        # Clamp the block index so phantom steps re-read the last real block
        # (cheap, discarded) instead of reading out of bounds.
        in_spec = pl.BlockSpec(
            (tm, LANES),
            lambda p, j, bpp=blocks_per_part, last=total_blocks - 1: (
                jnp.minimum(p * bpp + j, last), 0))

        max_acc, min_acc, ssq_acc = pl.pallas_call(
            kernel,
            out_shape=(acc_shape, acc_shape, acc_shape),
            grid_spec=pltpu.PrefetchScalarGridSpec(
                num_scalar_prefetch=0,
                grid=(num_parts, blocks_per_part),
                in_specs=[in_spec],
                out_specs=(acc_spec, acc_spec, acc_spec),
            ),
            compiler_params=pltpu.CompilerParams(
                # TODO(synk): on v7x, switch the leading axis to
                # pltpu.CORE_PARALLEL if profiling shows plain "parallel" does
                # not shard the grid across the two TensorCores.
                dimension_semantics=("parallel", "arbitrary"),
                vmem_limit_bytes=_VMEM_LIMIT_BYTES,
            ),
            cost_estimate=pl.CostEstimate(
                flops=4 * n_main,
                transcendentals=0,
                bytes_accessed=n_main * itemsize),
        )(slab)

        # Tiny final reductions + scalar epilogue in plain JAX.
        max_val = jnp.max(max_acc)
        min_val = jnp.min(min_acc)
        sum_sq = jnp.sum(ssq_acc)

        if n_main != n:
            tail = flat[n_main:].astype(jnp.float32)   # < 1024 elements
            sum_sq = sum_sq + jnp.sum(tail * tail)
            max_val = jnp.maximum(max_val, jnp.max(tail))
            min_val = jnp.minimum(min_val, jnp.min(tail))

    a = sum_sq / jnp.float32(n)
    b = (1.0 - max_val) ** 2
    c = min_val ** 2
    loss = jnp.float32(gamma) * (b + c)
    return loss, (a, b, c)


def _reference(attention, gamma):
    x = attention.astype(jnp.float32)
    a = jnp.mean(x ** 2)
    b = (1.0 - jnp.max(x)) ** 2
    c = jnp.min(x) ** 2
    return gamma * (b + c), (a, b, c)


def _check(attention, gamma=0.2, block_bytes=None, rtol=1e-5, atol=1e-6):
    loss, (a, b, c) = attention_loss_v2(attention, gamma, block_bytes=block_bytes)
    jax.block_until_ready(loss)
    ref_loss, (ra, rb, rc) = _reference(attention, gamma)
    for got, want, name in ((loss, ref_loss, "loss"), (a, ra, "a"),
                            (b, rb, "b"), (c, rc, "c")):
        assert jnp.allclose(got, want, rtol=rtol, atol=atol), (name, got, want)


if __name__ == "__main__":
    key = jax.random.PRNGKey(0)
    k1, k2, k3, k4 = jax.random.split(key, 4)

    # Primary small example (typical attention map).
    _check(jax.random.uniform(k1, (2, 4, 16, 16), dtype=jnp.float32))

    # numel % 1024 != 0: kernel on aligned prefix + jnp tail (no pad copy).
    _check(jax.random.uniform(k2, (3, 5, 7, 11), dtype=jnp.float32))

    # Multi-block / 2-part / phantom-block / masked-last-block path, forced
    # small block size so the test tensor stays tiny.
    _check(jax.random.uniform(k3, (2, 4, 72, 64), dtype=jnp.float32),
           block_bytes=64 * 1024)

    # bf16 input (cast-to-f32 accumulate path).
    _check(jax.random.uniform(k4, (2, 4, 64, 64), dtype=jnp.bfloat16),
           rtol=1e-4, atol=1e-5)

    print("KERNEL_OK")
</pallas_src>

<mosaic_0001>
module attributes {stable_mosaic.version = 11 : i64} {
  func.func @_attention_stats_kernel(%arg0: i32, %arg1: i32, %arg2: memref<16x128xf32, #tpu.memory_space<vmem>>, %arg3: memref<8x128xf32, #tpu.memory_space<vmem>>, %arg4: memref<8x128xf32, #tpu.memory_space<vmem>>, %arg5: memref<8x128xf32, #tpu.memory_space<vmem>>) attributes {dimension_semantics = [#tpu.dimension_semantics<parallel>, #tpu.dimension_semantics<arbitrary>], iteration_bounds = array<i64: 1, 1>, scalar_prefetch = 0 : i64, scratch_operands = 0 : i64, tpu.core_type = #tpu.core_type<tc>, window_params = [{transform_indices = @transform_0, window_bounds = array<i64: 16, 128>}, {transform_indices = @transform_1, window_bounds = array<i64: 8, 128>}, {transform_indices = @transform_2, window_bounds = array<i64: 8, 128>}, {transform_indices = @transform_3, window_bounds = array<i64: 8, 128>}]} {
    %c0_i32 = arith.constant 0 : i32
    %0 = arith.cmpi eq, %arg1, %c0_i32 : i32
    %1 = arith.extui %0 : i1 to i32
    %c0_i32_0 = arith.constant 0 : i32
    %2 = arith.cmpi ne, %1, %c0_i32_0 : i32
    scf.if %2 {
      %cst_16 = arith.constant 0xFF800000 : f32
      %21 = vector.broadcast %cst_16 : f32 to vector<8x128xf32>
      %c0_17 = arith.constant 0 : index
      %c0_18 = arith.constant 0 : index
      %22 = vector.load %arg3[%c0_17, %c0_18] : memref<8x128xf32, #tpu.memory_space<vmem>>, vector<8x128xf32>
      tpu.vector_store %arg3[%c0_17, %c0_18], %21 {strides = array<i32>} : memref<8x128xf32, #tpu.memory_space<vmem>>, vector<8x128xf32>,
      %cst_19 = arith.constant 0x7F800000 : f32
      %23 = vector.broadcast %cst_19 : f32 to vector<8x128xf32>
      %c0_20 = arith.constant 0 : index
      %c0_21 = arith.constant 0 : index
      %24 = vector.load %arg4[%c0_20, %c0_21] : memref<8x128xf32, #tpu.memory_space<vmem>>, vector<8x128xf32>
      tpu.vector_store %arg4[%c0_20, %c0_21], %23 {strides = array<i32>} : memref<8x128xf32, #tpu.memory_space<vmem>>, vector<8x128xf32>,
      %cst_22 = arith.constant 0.000000e+00 : f32
      %25 = vector.broadcast %cst_22 : f32 to vector<8x128xf32>
      %c0_23 = arith.constant 0 : index
      %c0_24 = arith.constant 0 : index
      %26 = vector.load %arg5[%c0_23, %c0_24] : memref<8x128xf32, #tpu.memory_space<vmem>>, vector<8x128xf32>
      tpu.vector_store %arg5[%c0_23, %c0_24], %25 {strides = array<i32>} : memref<8x128xf32, #tpu.memory_space<vmem>>, vector<8x128xf32>,
    } else {
    }
    %c0 = arith.constant 0 : index
    %c0_1 = arith.constant 0 : index
    %3 = vector.load %arg3[%c0, %c0_1] : memref<8x128xf32, #tpu.memory_space<vmem>>, vector<8x128xf32>
    %c0_2 = arith.constant 0 : index
    %c0_3 = arith.constant 0 : index
    %4 = vector.load %arg4[%c0_2, %c0_3] : memref<8x128xf32, #tpu.memory_space<vmem>>, vector<8x128xf32>
    %c0_4 = arith.constant 0 : index
    %c0_5 = arith.constant 0 : index
    %5 = vector.load %arg5[%c0_4, %c0_5] : memref<8x128xf32, #tpu.memory_space<vmem>>, vector<8x128xf32>
    %c0_i32_6 = arith.constant 0 : i32
    %c16_i32 = arith.constant 16 : i32
    %6 = arith.muli %c0_i32_6, %c16_i32 : i32
    %7 = tpu.assume_multiple %6, 16 : i32
    %8 = arith.index_cast %7 : i32 to index
    %c0_7 = arith.constant 0 : index
    %9 = vector.load %arg2[%8, %c0_7] : memref<16x128xf32, #tpu.memory_space<vmem>>, vector<16x128xf32>
    %10 = vector.shape_cast %9 : vector<16x128xf32> to vector<2x8x128xf32>
    %cst = arith.constant dense<0xFF800000> : vector<8x128xf32>
    %11 = vector.multi_reduction <maximumf>, %10, %cst [0] : vector<2x8x128xf32> to vector<8x128xf32>
    %12 = arith.maximumf %3, %11 : vector<8x128xf32>
    %cst_8 = arith.constant dense<0x7F800000> : vector<8x128xf32>
    %13 = vector.multi_reduction <minimumf>, %10, %cst_8 [0] : vector<2x8x128xf32> to vector<8x128xf32>
    %14 = arith.minimumf %4, %13 : vector<8x128xf32>
    %15 = arith.mulf %10, %10 : vector<2x8x128xf32>
    %cst_9 = arith.constant dense<0.000000e+00> : vector<8x128xf32>
    %16 = vector.multi_reduction <add>, %15, %cst_9 [0] : vector<2x8x128xf32> to vector<8x128xf32>
    %17 = arith.addf %5, %16 : vector<8x128xf32>
    %c1_i32 = arith.constant 1 : i32
    %c0_10 = arith.constant 0 : index
    %c0_11 = arith.constant 0 : index
    %18 = vector.load %arg3[%c0_10, %c0_11] : memref<8x128xf32, #tpu.memory_space<vmem>>, vector<8x128xf32>
    tpu.vector_store %arg3[%c0_10, %c0_11], %12 {strides = array<i32>} : memref<8x128xf32, #tpu.memory_space<vmem>>, vector<8x128xf32>,
    %c0_12 = arith.constant 0 : index
    %c0_13 = arith.constant 0 : index
    %19 = vector.load %arg4[%c0_12, %c0_13] : memref<8x128xf32, #tpu.memory_space<vmem>>, vector<8x128xf32>
    tpu.vector_store %arg4[%c0_12, %c0_13], %14 {strides = array<i32>} : memref<8x128xf32, #tpu.memory_space<vmem>>, vector<8x128xf32>,
    %c0_14 = arith.constant 0 : index
    %c0_15 = arith.constant 0 : index
    %20 = vector.load %arg5[%c0_14, %c0_15] : memref<8x128xf32, #tpu.memory_space<vmem>>, vector<8x128xf32>
    tpu.vector_store %arg5[%c0_14, %c0_15], %17 {strides = array<i32>} : memref<8x128xf32, #tpu.memory_space<vmem>>, vector<8x128xf32>,
    return
  }
  func.func @transform_0(%arg0: i32, %arg1: i32) -> (i32, i32) {
    %c1_i32 = arith.constant 1 : i32
    %0 = arith.muli %arg0, %c1_i32 : i32
    %1 = arith.addi %0, %arg1 : i32
    %c0_i32 = arith.constant 0 : i32
    %2 = arith.minsi %1, %c0_i32 : i32
    %c0_i32_0 = arith.constant 0 : i32
    %c0_i32_1 = arith.constant 0 : i32
    return %2, %c0_i32_0 : i32, i32
  }
  func.func @transform_1(%arg0: i32, %arg1: i32) -> (i32, i32) {
    %c0_i32 = arith.constant 0 : i32
    %c0_i32_0 = arith.constant 0 : i32
    return %arg0, %c0_i32 : i32, i32
  }
  func.func @transform_2(%arg0: i32, %arg1: i32) -> (i32, i32) {
    %c0_i32 = arith.constant 0 : i32
    %c0_i32_0 = arith.constant 0 : i32
    return %arg0, %c0_i32 : i32, i32
  }
  func.func @transform_3(%arg0: i32, %arg1: i32) -> (i32, i32) {
    %c0_i32 = arith.constant 0 : i32
    %c0_i32_0 = arith.constant 0 : i32
    return %arg0, %c0_i32 : i32, i32
  }
}

</mosaic_0001>

<bundles_post_ra>
// kernel: tpu_custom_call.1
= control target key start
LH: loop header
LB: loop body
LE: loop exit
PB: predicated region body
PF: predicated region fallthrough
CT: control target
= control target key end

     0   :  { %9 = vsyncpa [#allocation3], 0  ;;  %s295_s0 = inlined_call_operand.hbm [shape: f32[16,128], index: 0, kind: input, shape index: {}]   ;;  %s296_s1 = inlined_call_operand.hbm [shape: f32[8,128], index: 1, kind: output, shape index: {0}]   ;;  %s297_s2 = inlined_call_operand.hbm [shape: f32[8,128], index: 2, kind: output, shape index: {1}]   ;;  %s298_s3 = inlined_call_operand.hbm [shape: f32[8,128], index: 3, kind: output, shape index: {2}]  }
   0x1   :  { %10 = vsyncpa [#allocation4], 0 }
   0x2   :  { %11 = vsyncpa [#allocation7], 0  ;;  %s207_s12 = smov [#allocation2]   ;;  %s113_s16 = scalar_lea.hbm %s295_s0, 256 }
   0x3   :  { %s23_s13 = sshll.u32 %s207_s12, 4  ;;  %p114_p0 = scmp.ne.s32.totalorder %s295_s0, %s113_s16  ;;  %s24_s13 = int_to_ptr.vmem [resolvable:$true] %s23_s13 }
   0x4   :  { %p117_p1 = scmp.lt.u32.totalorder %s113_s16, %s295_s0 }
   0x6   :  { %p119_p2 = pnand %p117_p1, %p114_p0 }
   0x8   :  { %122 = shalt.err (!%p119_p2)
}
   0x9   :  { %s123_s21 = scalar_lea.vmem %s24_s13, 256  ;;  %p128_p4 = scmp.lt.s32.totalorder %s24_s13, %s24_s13 }
   0xa   :  { %p124_p3 = scmp.ne.s32.totalorder %s24_s13, %s123_s21  ;;  %p129_p5 = scmp.lt.s32.totalorder %s123_s21, %s123_s21 }
   0xc   :  { %p130_p6 = por %p129_p5, %p128_p4 }
   0xe   :  { %p131_p7 = pnand %p130_p6, %p124_p3 }
  0x10   :  { %134 = shalt.err (!%p131_p7)
}
  0x11   :  { %s208_s22 = smov 128   ;;  %s209_s23 = smov 8  }
  0x12   :  { %29 = dma.hbm_to_vmem [thread:$0]  %s295_s0, 256, %s24_s13, [#allocation3], %s208_s22, %s208_s22, %s209_s23  }
  0x13   :  { %201 = dma.done.wait [#allocation3], 256  }
  0x14   :  { %202 = vsyncadd [#allocation3], 4294967040  ;;  %v47_v0 = vld [vmem:[#allocation2] sm:$0xff]  ;;  %v48_v1 = vld [vmem:[#allocation2 + $0x8] sm:$0xff]  ;;  %s210_s26 = smov [#allocation6]   ;;  %s211_s28 = smov [#allocation5]  }
  0x15   :  { %s76_s27 = sshll.u32 %s210_s26, 4  ;;  %v51_v2 = vmin.f32 %v47_v0, %v48_v1  ;;  %v49_v3 = vmax.f32 %v47_v0, %v48_v1  ;;  %v53_v4 = vmul.f32 %v47_v0, %v47_v0  ;;  %v54_v5 = vmul.f32 %v48_v1, %v48_v1  ;;  %s66_s29 = sshll.u32 %s211_s28, 4  ;;  %s77_s27 = int_to_ptr.vmem [resolvable:$true] %s76_s27  ;;  %s245_s29 = int_to_ptr.vmem [resolvable:$true] %s66_s29 }
  0x16   :  { %s212_s30 = smov [#allocation8]   ;;  %s135_s0 = scalar_lea.vmem %s77_s27, 128 }
  0x17   :  { %s86_s4 = sshll.u32 %s212_s30, 4  ;;  %v55_v6 = vadd.f32 %v54_v5, %v53_v4  ;;  %58 = vst [vmem:[#allocation6] sm:$0xff] %v51_v2  ;;  %57 = vst [vmem:[#allocation5] sm:$0xff] %v49_v3  ;;  %p136_p8 = scmp.ne.s32.totalorder %s77_s27, %s135_s0  ;;  %s247_s4 = int_to_ptr.vmem [resolvable:$true] %s86_s4 }
  0x18   :  { %p140_p9 = scmp.lt.s32.totalorder %s77_s27, %s77_s27  ;;  %p141_p10 = scmp.lt.s32.totalorder %s135_s0, %s135_s0 }
  0x1a   :  { %p142_p11 = por %p141_p10, %p140_p9 }
  0x1c   :  { %p143_p12 = pnand %p142_p11, %p136_p8 }
  0x1e   :  { %146 = shalt.err (!%p143_p12)
}
  0x1f   :  { %s147_s7 = scalar_lea.hbm %s297_s2, 128 }
  0x20   :  { %p148_p13 = scmp.ne.s32.totalorder %s297_s2, %s147_s7  ;;  %p151_p0 = scmp.lt.u32.totalorder %s147_s7, %s297_s2 }
  0x22   :  { %p153_p1 = pnand %p151_p0, %p148_p13 }
  0x24   :  { %156 = shalt.err (!%p153_p1)
}
  0x25   :  { %79 = dma.vmem_to_hbm [thread:$0]  %s77_s27, 128, %s297_s2, [#allocation7]   ;;  %59 = vst [vmem:[#allocation8] sm:$0xff] %v55_v6 }
  0x26   :  { %s157_s14 = scalar_lea.vmem %s245_s29, 128  ;;  %p162_p3 = scmp.lt.s32.totalorder %s245_s29, %s245_s29 }
  0x27   :  { %p158_p2 = scmp.ne.s32.totalorder %s245_s29, %s157_s14  ;;  %p163_p4 = scmp.lt.s32.totalorder %s157_s14, %s157_s14 }
  0x29   :  { %p164_p5 = por %p163_p4, %p162_p3 }
  0x2b   :  { %p165_p6 = pnand %p164_p5, %p158_p2 }
  0x2d   :  { %168 = shalt.err (!%p165_p6)
}
  0x2e   :  { %s169_s17 = scalar_lea.hbm %s296_s1, 128 }
  0x2f   :  { %p170_p7 = scmp.ne.s32.totalorder %s296_s1, %s169_s17  ;;  %p173_p8 = scmp.lt.u32.totalorder %s169_s17, %s296_s1 }
  0x31   :  { %p175_p9 = pnand %p173_p8, %p170_p7 }
  0x33   :  { %178 = shalt.err (!%p175_p9)
}
  0x34   :  { %69 = dma.vmem_to_hbm [thread:$0]  %s245_s29, 128, %s296_s1, [#allocation4]  }
  0x35   :  { %s179_s23 = scalar_lea.vmem %s247_s4, 128  ;;  %p184_p11 = scmp.lt.s32.totalorder %s247_s4, %s247_s4 }
  0x36   :  { %p180_p10 = scmp.ne.s32.totalorder %s247_s4, %s179_s23  ;;  %p185_p12 = scmp.lt.s32.totalorder %s179_s23, %s179_s23 }
  0x38   :  { %p186_p13 = por %p185_p12, %p184_p11 }
  0x3a   :  { %p187_p0 = pnand %p186_p13, %p180_p10 }
  0x3c   :  { %190 = shalt.err (!%p187_p0)
}
  0x3d   :  { %s191_s26 = scalar_lea.hbm %s298_s3, 128 }
  0x3e   :  { %p192_p1 = scmp.ne.s32.totalorder %s298_s3, %s191_s26  ;;  %p195_p2 = scmp.lt.u32.totalorder %s191_s26, %s298_s3 }
  0x40   :  { %p197_p3 = pnand %p195_p2, %p192_p1 }
  0x42   :  { %200 = shalt.err (!%p197_p3)
}
  0x43   :  { %89 = dma.vmem_to_hbm [thread:$0]  %s247_s4, 128, %s298_s3, [#allocation7]  }
  0x44   :  { %203 = dma.done.wait [#allocation4], 128  }
  0x45   :  { %204 = vsyncadd [#allocation4], 4294967168 }
  0x46   :  { %205 = dma.done.wait [#allocation7], 256  }
  0x47   :  { %206 = vsyncadd [#allocation7], 4294967040 }
  0x48   :  { %99 = vsyncpa [#allocation3], 1 }
  0x49   :  { %100 = vsyncpa [#allocation4], 1 }
  0x4a   :  { %101 = vsyncpa [#allocation7], 1 }

</bundles_post_ra>
